<compile_context>
chip_gen: v7x
topology: tpu7x:2x2x1
jax: 0.10.0
libtpu: 0.0.40
codegen_flags: <defaults>
</compile_context>

<pallas_src>
from functools import partial

import numpy as np
import jax
import jax.numpy as jnp
from jax import lax
from jax.experimental import pallas as pl
from jax.experimental.pallas import tpu as pltpu


# ----------------------------- helpers ------------------------------------- #

def _round_up(n, m):
    return ((n + m - 1) // m) * m


# ----------------------------- Pallas kernels ------------------------------ #

def _normalize_kernel(v_ref, o_ref):
    """Row-wise L2 normalize: v * rsqrt(max(||v||^2, 1e-24)) == F.normalize(v, dim=1)."""
    v = v_ref[...].astype(jnp.float32)
    ss = jnp.sum(v * v, axis=-1, keepdims=True)
    o_ref[...] = v * lax.rsqrt(jnp.maximum(ss, 1e-24))


def _l2_normalize_pallas(v, row_tile):
    n, d = v.shape  # n % row_tile == 0, d multiple of 128 (padded by caller)
    return pl.pallas_call(
        _normalize_kernel,
        out_shape=jax.ShapeDtypeStruct((n, d), jnp.float32),
        grid=(n // row_tile,),
        in_specs=[pl.BlockSpec((row_tile, d), lambda i: (i, 0))],
        out_specs=pl.BlockSpec((row_tile, d), lambda i: (i, 0)),
        compiler_params=pltpu.CompilerParams(dimension_semantics=("parallel",)),
    )(v)


def _sim_matmul_kernel(zn_ref, xn_ref, o_ref, acc_ref):
    """sims tile = zn_tile @ xn_tile^T, accumulated over the K grid axis (MXU)."""

    @pl.when(pl.program_id(2) == 0)
    def _():
        acc_ref[...] = jnp.zeros_like(acc_ref)

    # Contract the last dim of both operands directly: no in-kernel transpose.
    acc_ref[...] += lax.dot_general(
        zn_ref[...], xn_ref[...],
        dimension_numbers=(((1,), (1,)), ((), ())),
        preferred_element_type=jnp.float32,
    )

    @pl.when(pl.program_id(2) == pl.num_programs(2) - 1)
    def _():
        o_ref[...] = acc_ref[...]


def _sim_matmul_pallas(zn, xn, tm, tn, tk):
    nzp, dp = zn.shape
    nxp, _ = xn.shape
    grid = (nzp // tm, nxp // tn, dp // tk)
    return pl.pallas_call(
        _sim_matmul_kernel,
        out_shape=jax.ShapeDtypeStruct((nzp, nxp), jnp.float32),
        grid_spec=pltpu.PrefetchScalarGridSpec(
            num_scalar_prefetch=0,
            grid=grid,
            in_specs=[
                pl.BlockSpec((tm, tk), lambda i, j, k: (i, k)),
                pl.BlockSpec((tn, tk), lambda i, j, k: (j, k)),
            ],
            out_specs=pl.BlockSpec((tm, tn), lambda i, j, k: (i, j)),
            scratch_shapes=[pltpu.VMEM((tm, tn), jnp.float32)],
        ),
        compiler_params=pltpu.CompilerParams(
            dimension_semantics=("parallel", "parallel", "arbitrary"),
            vmem_limit_bytes=64 * 1024 * 1024,
        ),
    )(zn, xn)


@partial(jax.jit, static_argnames=("use_bf16",))
def compute_sims_pallas(z, x, use_bf16=False):
    """sims = F.normalize(z, dim=1) @ F.normalize(x, dim=1).T via Pallas."""
    nz, d = z.shape
    nx, _ = x.shape

    # Tile sizes (modest enough for v5e's 16 MiB scoped default and v7x's
    # 64 MiB physical VMEM, large enough to amortize per-step overhead).
    dp0 = _round_up(d, 128)
    tk = min(dp0, 512)
    dp = _round_up(dp0, tk)
    tm = min(_round_up(nz, 8), 256)
    tn = min(_round_up(nx, 128), 512)
    nzp = _round_up(nz, tm)
    nxp = _round_up(nx, tn)

    # Zero-pad to lane/sublane-aligned, tile-divisible shapes (zeros are inert
    # under both the norm and the dot; padded output is sliced off below).
    zp = jnp.zeros((nzp, dp), jnp.float32).at[:nz, :d].set(z.astype(jnp.float32))
    xp = jnp.zeros((nxp, dp), jnp.float32).at[:nx, :d].set(x.astype(jnp.float32))

    # Normalize once (hoisted out of the matmul tile body).
    zn = _l2_normalize_pallas(zp, tm)
    xn = _l2_normalize_pallas(xp, tn)

    if use_bf16:  # optional faster MXU feed on v6e/v7x; keep f32 accumulate
        zn = zn.astype(jnp.bfloat16)
        xn = xn.astype(jnp.bfloat16)

    sims_p = _sim_matmul_pallas(zn, xn, tm, tn, tk)
    return sims_p[:nz, :nx]


# ----------------------------- host-side helpers --------------------------- #

def _exact_drop_dtw(zx_costs, x_drop_costs):
    # TODO(synk): the reference `exact_batch_drop_dtw_machine` source was not
    # provided; this is the standard Drop-DTW DP (x-drop only, one-to-one
    # matches, every z consumed), matching one_to_many=many_to_one=False.
    K, N = zx_costs.shape
    INF = 1e18
    Dm = np.full((K + 1, N + 1), INF, dtype=np.float64)  # state: x_n matched
    Dd = np.full((K + 1, N + 1), INF, dtype=np.float64)  # state: x_n dropped
    Dm[0, 0] = 0.0
    Dd[0, 0] = 0.0
    for n in range(1, N + 1):
        Dd[0, n] = Dd[0, n - 1] + x_drop_costs[n - 1]
    for k in range(1, K + 1):
        for n in range(1, N + 1):
            prev = min(Dm[k - 1, n - 1], Dd[k - 1, n - 1])
            Dm[k, n] = zx_costs[k - 1, n - 1] + prev
            Dd[k, n] = x_drop_costs[n - 1] + min(Dm[k, n - 1], Dd[k, n - 1])
    total = min(Dm[K, N], Dd[K, N])
    state = 0 if Dm[K, N] <= Dd[K, N] else 1
    k, n = K, N
    path = []
    while k > 0 or n > 0:
        if state == 0:
            path.append((k, n, 0))
            state = 0 if Dm[k - 1, n - 1] <= Dd[k - 1, n - 1] else 1
            k, n = k - 1, n - 1
        else:
            path.append((k, n, 1))
            state = 0 if Dm[k, n - 1] <= Dd[k, n - 1] else 1
            n = n - 1
    path.reverse()
    return float(total), path


# -------------------------------- DTWMatcher ------------------------------- #

class DTWMatcher:
    """JAX/Pallas port of pdvc/matcher_align.DTWMatcher (default drop_z=False path)."""

    def __init__(self, keep_percentile, top_band_size=0, given_droplines=None,
                 drop_z=False, one_to_many=False, many_to_one=False, contiguous=False):
        self.keep_percentile = keep_percentile
        self.top_band_size = top_band_size
        self.given_droplines = given_droplines
        self.drop_z = drop_z
        self.one_to_many = one_to_many
        self.many_to_one = many_to_one
        self.contiguous = contiguous
        self.last_sims = None

    def forward(self, text_embed, event_embed):
        # ---- hot path: L2-normalize + similarity matmul in Pallas ----
        sims = compute_sims_pallas(text_embed, event_embed)
        self.last_sims = sims

        # ---- dropline (global top-k percentile), plain JAX glue ----
        if self.given_droplines is not None:
            dropline = jnp.asarray(self.given_droplines[0], jnp.float32).reshape(1, 1)
        else:
            top_sim = sims
            if 0 < self.top_band_size < sims.shape[1]:
                top_sim = lax.top_k(sims, self.top_band_size)[0]
            if self.keep_percentile > 1:
                dropline = (jnp.min(top_sim) - 5.0).reshape(1, 1)
            else:
                k = max(1, int(top_sim.size * self.keep_percentile))
                dropline = lax.top_k(top_sim.reshape(-1), k)[0][-1].reshape(1, 1)

        # ---- cost construction: trivial broadcast subtract (no extra kernel) ----
        zx_costs = dropline.astype(jnp.float32) - sims
        zx_costs_np = np.asarray(jax.block_until_ready(zx_costs), dtype=np.float64)

        x_drop_cost = np.zeros((sims.shape[1],), dtype=np.float64)

        if self.drop_z:
            # TODO(synk): batch_NW_machine / exact_batch_double_drop_dtw_machine
            # sources not provided; drop_z=True branch not implemented.
            raise NotImplementedError("drop_z=True path not implemented")

        # Sequential DP kept on host (data-dependent backtracking).
        total_cost, align_path = _exact_drop_dtw(zx_costs_np, x_drop_cost)
        align_paths = [align_path]

        # (corresp_matrices are computed but never returned in the reference;
        #  skipped here as they do not affect the outputs.)

        text_indices = np.asarray(
            [i - 1 for i, _, s in align_paths[-1] if s == 0], dtype=np.int64)
        query_indices = np.asarray(
            [j - 1 for _, j, s in align_paths[-1] if s == 0], dtype=np.int64)
        rearrange = np.argsort(text_indices, kind="stable")
        text_indices = text_indices[rearrange]
        query_indices = query_indices[rearrange]
        indices = [(query_indices, text_indices)]
        return indices, total_cost


# ---------------------------------- main ----------------------------------- #

if __name__ == "__main__":
    key = jax.random.PRNGKey(0)
    kz, kx = jax.random.split(key)
    Nz, Nx, D = 8, 16, 32  # text tokens, event queries, hidden dim
    text_embed = jax.random.normal(kz, (Nz, D), dtype=jnp.float32)
    event_embed = jax.random.normal(kx, (Nx, D), dtype=jnp.float32)

    matcher = DTWMatcher(keep_percentile=0.3)
    indices, total_cost = matcher.forward(text_embed, event_embed)

    # Block on the device-side product of the Pallas hot path (no redundant
    # second kernel launch) and sanity-check against a plain-JAX reference.
    sims = jax.block_until_ready(matcher.last_sims)
    zn_ref = text_embed / jnp.maximum(
        jnp.linalg.norm(text_embed, axis=1, keepdims=True), 1e-12)
    xn_ref = event_embed / jnp.maximum(
        jnp.linalg.norm(event_embed, axis=1, keepdims=True), 1e-12)
    sims_ref = zn_ref @ xn_ref.T
    assert np.allclose(np.asarray(sims), np.asarray(sims_ref), atol=1e-5)

    q_idx, t_idx = indices[0]
    assert q_idx.shape == t_idx.shape and q_idx.shape[0] >= 1
    assert np.all(t_idx >= 0) and np.all(t_idx < Nz)
    assert np.all(q_idx >= 0) and np.all(q_idx < Nx)
    print("KERNEL_OK")
</pallas_src>

<mosaic_0001>
module attributes {stable_mosaic.version = 11 : i64} {
  func.func @_normalize_kernel(%arg0: i32, %arg1: memref<128x128xf32, #tpu.memory_space<vmem>>, %arg2: memref<128x128xf32, #tpu.memory_space<vmem>>) attributes {dimension_semantics = [#tpu.dimension_semantics<parallel>], iteration_bounds = array<i64: 1>, scalar_prefetch = 0 : i64, scratch_operands = 0 : i64, tpu.core_type = #tpu.core_type<tc>, window_params = [{transform_indices = @transform_0, window_bounds = array<i64: 128, 128>}, {transform_indices = @transform_1, window_bounds = array<i64: 128, 128>}]} {
    %c0 = arith.constant 0 : index
    %c0_0 = arith.constant 0 : index
    %0 = vector.load %arg1[%c0, %c0_0] : memref<128x128xf32, #tpu.memory_space<vmem>>, vector<128x128xf32>
    %1 = arith.mulf %0, %0 : vector<128x128xf32>
    %cst = arith.constant dense<0.000000e+00> : vector<128xf32>
    %2 = vector.multi_reduction <add>, %1, %cst [1] : vector<128x128xf32> to vector<128xf32>
    %3 = vector.shape_cast %2 : vector<128xf32> to vector<128x1xf32>
    %cst_1 = arith.constant 1.000000e-24 : f32
    %4 = vector.broadcast %cst_1 : f32 to vector<128x1xf32>
    %5 = arith.maximumf %3, %4 : vector<128x1xf32>
    %6 = math.rsqrt %5 : vector<128x1xf32>
    %7 = vector.broadcast %6 : vector<128x1xf32> to vector<128x128xf32>
    %8 = arith.mulf %0, %7 : vector<128x128xf32>
    %c0_2 = arith.constant 0 : index
    %c0_3 = arith.constant 0 : index
    %9 = vector.load %arg2[%c0_2, %c0_3] : memref<128x128xf32, #tpu.memory_space<vmem>>, vector<128x128xf32>
    tpu.vector_store %arg2[%c0_2, %c0_3], %8 {strides = array<i32>} : memref<128x128xf32, #tpu.memory_space<vmem>>, vector<128x128xf32>,
    return
  }
  func.func @transform_0(%arg0: i32) -> (i32, i32) {
    %c0_i32 = arith.constant 0 : i32
    %c0_i32_0 = arith.constant 0 : i32
    return %arg0, %c0_i32 : i32, i32
  }
  func.func @transform_1(%arg0: i32) -> (i32, i32) {
    %c0_i32 = arith.constant 0 : i32
    %c0_i32_0 = arith.constant 0 : i32
    return %arg0, %c0_i32 : i32, i32
  }
}

module attributes {stable_mosaic.version = 11 : i64} {
  func.func @_sim_matmul_kernel(%arg0: i32, %arg1: i32, %arg2: i32, %arg3: memref<8x128xf32, #tpu.memory_space<vmem>>, %arg4: memref<128x128xf32, #tpu.memory_space<vmem>>, %arg5: memref<8x128xf32, #tpu.memory_space<vmem>>, %arg6: memref<8x128xf32, #tpu.memory_space<vmem>>) attributes {dimension_semantics = [#tpu.dimension_semantics<parallel>, #tpu.dimension_semantics<parallel>, #tpu.dimension_semantics<arbitrary>], iteration_bounds = array<i64: 1, 1, 1>, scalar_prefetch = 0 : i64, scratch_operands = 1 : i64, tpu.core_type = #tpu.core_type<tc>, window_params = [{transform_indices = @transform_0, window_bounds = array<i64: 8, 128>}, {transform_indices = @transform_1, window_bounds = array<i64: 128, 128>}, {transform_indices = @transform_2, window_bounds = array<i64: 8, 128>}]} {
    %c0_i32 = arith.constant 0 : i32
    %0 = arith.cmpi eq, %arg2, %c0_i32 : i32
    %1 = arith.extui %0 : i1 to i32
    %c0_i32_0 = arith.constant 0 : i32
    %2 = arith.cmpi ne, %1, %c0_i32_0 : i32
    scf.if %2 {
      %cst_10 = arith.constant 0.000000e+00 : f32
      %12 = vector.broadcast %cst_10 : f32 to vector<8x128xf32>
      %c0_11 = arith.constant 0 : index
      %c0_12 = arith.constant 0 : index
      %13 = vector.load %arg6[%c0_11, %c0_12] : memref<8x128xf32, #tpu.memory_space<vmem>>, vector<8x128xf32>
      tpu.vector_store %arg6[%c0_11, %c0_12], %12 {strides = array<i32>} : memref<8x128xf32, #tpu.memory_space<vmem>>, vector<8x128xf32>,
    } else {
    }
    %c0 = arith.constant 0 : index
    %c0_1 = arith.constant 0 : index
    %3 = vector.load %arg6[%c0, %c0_1] : memref<8x128xf32, #tpu.memory_space<vmem>>, vector<8x128xf32>
    %c0_2 = arith.constant 0 : index
    %c0_3 = arith.constant 0 : index
    %4 = vector.load %arg3[%c0_2, %c0_3] : memref<8x128xf32, #tpu.memory_space<vmem>>, vector<8x128xf32>
    %c0_4 = arith.constant 0 : index
    %c0_5 = arith.constant 0 : index
    %5 = vector.load %arg4[%c0_4, %c0_5] : memref<128x128xf32, #tpu.memory_space<vmem>>, vector<128x128xf32>
    %cst = arith.constant dense<0.000000e+00> : vector<8x128xf32>
    %6 = tpu.matmul %4, %5, %cst {dimension_numbers = #tpu.dot_dimension_numbers<[1], [1], [0], [0], [0, 0, 1, 0], [], []>} : vector<8x128xf32>, vector<128x128xf32>, vector<8x128xf32> -> vector<8x128xf32>
    %7 = arith.addf %3, %6 : vector<8x128xf32>
    %c0_6 = arith.constant 0 : index
    %c0_7 = arith.constant 0 : index
    %8 = vector.load %arg6[%c0_6, %c0_7] : memref<8x128xf32, #tpu.memory_space<vmem>>, vector<8x128xf32>
    tpu.vector_store %arg6[%c0_6, %c0_7], %7 {strides = array<i32>} : memref<8x128xf32, #tpu.memory_space<vmem>>, vector<8x128xf32>,
    %c0_i32_8 = arith.constant 0 : i32
    %9 = arith.cmpi eq, %arg2, %c0_i32_8 : i32
    %10 = arith.extui %9 : i1 to i32
    %c0_i32_9 = arith.constant 0 : i32
    %11 = arith.cmpi ne, %10, %c0_i32_9 : i32
    scf.if %11 {
      %c0_10 = arith.constant 0 : index
      %c0_11 = arith.constant 0 : index
      %12 = vector.load %arg6[%c0_10, %c0_11] : memref<8x128xf32, #tpu.memory_space<vmem>>, vector<8x128xf32>
      %c0_12 = arith.constant 0 : index
      %c0_13 = arith.constant 0 : index
      %13 = vector.load %arg5[%c0_12, %c0_13] : memref<8x128xf32, #tpu.memory_space<vmem>>, vector<8x128xf32>
      tpu.vector_store %arg5[%c0_12, %c0_13], %12 {strides = array<i32>} : memref<8x128xf32, #tpu.memory_space<vmem>>, vector<8x128xf32>,
    } else {
    }
    return
  }
  func.func @transform_0(%arg0: i32, %arg1: i32, %arg2: i32) -> (i32, i32) {
    %c0_i32 = arith.constant 0 : i32
    return %arg0, %arg2 : i32, i32
  }
  func.func @transform_1(%arg0: i32, %arg1: i32, %arg2: i32) -> (i32, i32) {
    %c0_i32 = arith.constant 0 : i32
    return %arg1, %arg2 : i32, i32
  }
  func.func @transform_2(%arg0: i32, %arg1: i32, %arg2: i32) -> (i32, i32) {
    %c0_i32 = arith.constant 0 : i32
    return %arg0, %arg1 : i32, i32
  }
}

module attributes {stable_mosaic.version = 11 : i64} {
  func.func @_normalize_kernel(%arg0: i32, %arg1: memref<8x128xf32, #tpu.memory_space<vmem>>, %arg2: memref<8x128xf32, #tpu.memory_space<vmem>>) attributes {dimension_semantics = [#tpu.dimension_semantics<parallel>], iteration_bounds = array<i64: 1>, scalar_prefetch = 0 : i64, scratch_operands = 0 : i64, tpu.core_type = #tpu.core_type<tc>, window_params = [{transform_indices = @transform_0, window_bounds = array<i64: 8, 128>}, {transform_indices = @transform_1, window_bounds = array<i64: 8, 128>}]} {
    %c0 = arith.constant 0 : index
    %c0_0 = arith.constant 0 : index
    %0 = vector.load %arg1[%c0, %c0_0] : memref<8x128xf32, #tpu.memory_space<vmem>>, vector<8x128xf32>
    %1 = arith.mulf %0, %0 : vector<8x128xf32>
    %cst = arith.constant dense<0.000000e+00> : vector<8xf32>
    %2 = vector.multi_reduction <add>, %1, %cst [1] : vector<8x128xf32> to vector<8xf32>
    %3 = vector.shape_cast %2 : vector<8xf32> to vector<8x1xf32>
    %cst_1 = arith.constant 1.000000e-24 : f32
    %4 = vector.broadcast %cst_1 : f32 to vector<8x1xf32>
    %5 = arith.maximumf %3, %4 : vector<8x1xf32>
    %6 = math.rsqrt %5 : vector<8x1xf32>
    %7 = vector.broadcast %6 : vector<8x1xf32> to vector<8x128xf32>
    %8 = arith.mulf %0, %7 : vector<8x128xf32>
    %c0_2 = arith.constant 0 : index
    %c0_3 = arith.constant 0 : index
    %9 = vector.load %arg2[%c0_2, %c0_3] : memref<8x128xf32, #tpu.memory_space<vmem>>, vector<8x128xf32>
    tpu.vector_store %arg2[%c0_2, %c0_3], %8 {strides = array<i32>} : memref<8x128xf32, #tpu.memory_space<vmem>>, vector<8x128xf32>,
    return
  }
  func.func @transform_0(%arg0: i32) -> (i32, i32) {
    %c0_i32 = arith.constant 0 : i32
    %c0_i32_0 = arith.constant 0 : i32
    return %arg0, %c0_i32 : i32, i32
  }
  func.func @transform_1(%arg0: i32) -> (i32, i32) {
    %c0_i32 = arith.constant 0 : i32
    %c0_i32_0 = arith.constant 0 : i32
    return %arg0, %c0_i32 : i32, i32
  }
}

</mosaic_0001>

<bundles_post_ra>
// kernel: compute_sims_pallas.5
= control target key start
LH: loop header
LB: loop body
LE: loop exit
PB: predicated region body
PF: predicated region fallthrough
CT: control target
= control target key end

     0   :  { %7 = vsyncpa [#allocation4], 0  ;;  %s376_s0 = inlined_call_operand.hbm [shape: f32[8,128], index: 0, kind: input, shape index: {}]   ;;  %s377_s1 = inlined_call_operand.hbm [shape: f32[128,128], index: 1, kind: input, shape index: {}]   ;;  %s378_s2 = inlined_call_operand.hbm [shape: f32[8,128], index: 2, kind: output, shape index: {}]  }
   0x1   :  { %8 = vsyncpa [#allocation7], 0 }
   0x2   :  { %9 = vsyncpa [#allocation5], 0  ;;  %s310_s9 = smov [#allocation3]   ;;  %s311_s11 = smov [#allocation6]  }
   0x3   :  { %s16_s10 = sshll.u32 %s310_s9, 4  ;;  %s25_s12 = sshll.u32 %s311_s11, 4  ;;  %s17_s10 = int_to_ptr.vmem [resolvable:$true] %s16_s10  ;;  %s333_s12 = int_to_ptr.vmem [resolvable:$true] %s25_s12 }
   0x4   :  { %s238_s15 = scalar_lea.hbm %s376_s0, 128 }
   0x5   :  { %p239_p0 = scmp.ne.s32.totalorder %s376_s0, %s238_s15  ;;  %p242_p1 = scmp.lt.u32.totalorder %s238_s15, %s376_s0 }
   0x7   :  { %p244_p2 = pnand %p242_p1, %p239_p0 }
   0x9   :  { %247 = shalt.err (!%p244_p2)
}
   0xa   :  { %s248_s20 = scalar_lea.vmem %s17_s10, 128  ;;  %p253_p4 = scmp.lt.s32.totalorder %s17_s10, %s17_s10 }
   0xb   :  { %p249_p3 = scmp.ne.s32.totalorder %s17_s10, %s248_s20  ;;  %p254_p5 = scmp.lt.s32.totalorder %s248_s20, %s248_s20 }
   0xd   :  { %p255_p6 = por %p254_p5, %p253_p4 }
   0xf   :  { %p256_p7 = pnand %p255_p6, %p249_p3 }
  0x11   :  { %259 = shalt.err (!%p256_p7)
}
  0x12   :  { %19 = dma.hbm_to_vmem [thread:$0]  %s376_s0, 128, %s17_s10, [#allocation4]  }
  0x13   :  { %s260_s25 = scalar_lea.hbm %s377_s1, 2048 }
  0x14   :  { %p261_p8 = scmp.ne.s32.totalorder %s377_s1, %s260_s25  ;;  %p264_p9 = scmp.lt.u32.totalorder %s260_s25, %s377_s1 }
  0x16   :  { %p266_p10 = pnand %p264_p9, %p261_p8 }
  0x18   :  { %269 = shalt.err (!%p266_p10)
}
  0x19   :  { %s270_s30 = scalar_lea.vmem %s333_s12, 2048  ;;  %p275_p12 = scmp.lt.s32.totalorder %s333_s12, %s333_s12 }
  0x1a   :  { %p271_p11 = scmp.ne.s32.totalorder %s333_s12, %s270_s30  ;;  %p276_p13 = scmp.lt.s32.totalorder %s270_s30, %s270_s30 }
  0x1c   :  { %p277_p0 = por %p276_p13, %p275_p12 }
  0x1e   :  { %p278_p1 = pnand %p277_p0, %p271_p11 }
  0x20   :  { %281 = shalt.err (!%p278_p1)
}
  0x21   :  { %s312_s0 = smov 128   ;;  %s313_s3 = smov 8  }
  0x22   :  { %31 = dma.hbm_to_vmem [thread:$0]  %s377_s1, 2048, %s333_s12, [#allocation7], %s312_s0, %s312_s0, %s313_s3  }
  0x23   :  { %304 = dma.done.wait [#allocation4], 128  }
  0x24   :  { %305 = vsyncadd [#allocation4], 4294967168 }
  0x25   :  { %306 = dma.done.wait [#allocation7], 2048  }
  0x26   :  { %307 = vsyncadd [#allocation7], 4294965248  ;;  %v314_v0 = vmov 0.0|0.0   ;;  %vm315_vm0 = vmmov 0   ;;  %v316_v1 = vmov 0.0   ;;  %v45_v2 = vld [vmem:[#allocation6] sm:$0xff] }
  0x27   :  { %206 = vmatprep.subr.bf16.mxu0 %v314_v0  ;;  %203 = vmatprep.mubr.msk.f32.mxu0 %vm315_vm0, %v316_v1  ;;  %v46_v3 = vld [vmem:[#allocation6 + $0x8] sm:$0xff]  ;;  %v47_v5 = vld [vmem:[#allocation6 + $0x10] sm:$0xff]  ;;  %v48_v6 = vld [vmem:[#allocation6 + $0x18] sm:$0xff]  ;;  %s317_s1 = smov [#allocation8]  }
  0x28   :  { %v207_v4 = vpack.c.bf16 %v46_v3, %v45_v2  ;;  %v210_v7 = vpack.c.bf16 %v48_v6, %v47_v5  ;;  %v49_v8 = vld [vmem:[#allocation6 + $0x20] sm:$0xff]  ;;  %v50_v9 = vld [vmem:[#allocation6 + $0x28] sm:$0xff]  ;;  %v51_v11 = vld [vmem:[#allocation6 + $0x30] sm:$0xff]  ;;  %s144_s6 = sshll.u32 %s317_s1, 4  ;;  %s145_s6 = int_to_ptr.vmem [resolvable:$true] %s144_s6 }
  0x29   :  { %v213_v10 = vpack.c.bf16 %v50_v9, %v49_v8  ;;  %v52_v12 = vld [vmem:[#allocation6 + $0x38] sm:$0xff]  ;;  %v53_v14 = vld [vmem:[#allocation6 + $0x40] sm:$0xff]  ;;  %v54_v15 = vld [vmem:[#allocation6 + $0x48] sm:$0xff]  ;;  %s282_s7 = scalar_lea.vmem %s145_s6, 128  ;;  %p287_p3 = scmp.lt.s32.totalorder %s145_s6, %s145_s6 }
  0x2a   :  { %208 = vmatpush3.bf16.xpose.msra.mxu0 %v207_v4  ;;  %v216_v13 = vpack.c.bf16 %v52_v12, %v51_v11  ;;  %v219_v16 = vpack.c.bf16 %v54_v15, %v53_v14  ;;  %v55_v17 = vld [vmem:[#allocation6 + $0x50] sm:$0xff]  ;;  %v56_v18 = vld [vmem:[#allocation6 + $0x58] sm:$0xff]  ;;  %v57_v20 = vld [vmem:[#allocation6 + $0x60] sm:$0xff]  ;;  %p283_p2 = scmp.ne.s32.totalorder %s145_s6, %s282_s7  ;;  %p288_p4 = scmp.lt.s32.totalorder %s282_s7, %s282_s7 }
  0x2b   :  { %209 = vmatprep.subr.bf16.mxu0 %v314_v0  ;;  %v222_v19 = vpack.c.bf16 %v56_v18, %v55_v17  ;;  %v58_v21 = vld [vmem:[#allocation6 + $0x68] sm:$0xff]  ;;  %v59_v23 = vld [vmem:[#allocation6 + $0x70] sm:$0xff]  ;;  %v60_v24 = vld [vmem:[#allocation6 + $0x78] sm:$0xff] }
  0x2c   :  { %v225_v22 = vpack.c.bf16 %v58_v21, %v57_v20  ;;  %v228_v25 = vpack.c.bf16 %v60_v24, %v59_v23  ;;  %v44_v26 = vld [vmem:[#allocation3] sm:$0xff]  ;;  %p289_p5 = por %p288_p4, %p287_p3 }
  0x2e   :  { %p290_p6 = pnand %p289_p5, %p283_p2 }
  0x32   :  { %211 = vmatpush3.bf16.xpose.msra.mxu0 %v210_v7 }
  0x33   :  { %212 = vmatprep.subr.bf16.mxu0 %v314_v0 }
  0x3a   :  { %214 = vmatpush3.bf16.xpose.msra.mxu0 %v213_v10 }
  0x3b   :  { %215 = vmatprep.subr.bf16.mxu0 %v314_v0 }
  0x42   :  { %217 = vmatpush3.bf16.xpose.msra.mxu0 %v216_v13 }
  0x43   :  { %218 = vmatprep.subr.bf16.mxu0 %v314_v0 }
  0x4a   :  { %220 = vmatpush3.bf16.xpose.msra.mxu0 %v219_v16 }
  0x4b   :  { %221 = vmatprep.subr.bf16.mxu0 %v314_v0 }
  0x52   :  { %223 = vmatpush3.bf16.xpose.msra.mxu0 %v222_v19 }
  0x53   :  { %224 = vmatprep.subr.bf16.mxu0 %v314_v0 }
  0x5a   :  { %226 = vmatpush3.bf16.xpose.msra.mxu0 %v225_v22 }
  0x5b   :  { %227 = vmatprep.subr.bf16.mxu0 %v314_v0 }
  0x62   :  { %229 = vmatpush3.bf16.xpose.msra.mxu0 %v228_v25 }
  0x69   :  { %204 = vmatmul.mubr.f32.vlgmr.msra.gmra.mrb[0].mxu0 %v44_v26 }
 0x13c   :  { %v127_v27 = vpop.f32.mrb[0].mxu0 }
 0x13d   :  { %137 = vst [vmem:[#allocation8] sm:$0xff] %v127_v27  ;;  %v205_v28 = vpop.f32.mrb[1].mxu0 }
 0x13e   :  { %293 = shalt.err (!%p290_p6)
}
 0x13f   :  { %s294_s10 = scalar_lea.hbm %s378_s2, 128 }
 0x140   :  { %p295_p7 = scmp.ne.s32.totalorder %s378_s2, %s294_s10  ;;  %p298_p8 = scmp.lt.u32.totalorder %s294_s10, %s378_s2 }
 0x142   :  { %p300_p9 = pnand %p298_p8, %p295_p7 }
 0x144   :  { %303 = shalt.err (!%p300_p9)
}
 0x145   :  { %147 = dma.vmem_to_hbm [thread:$0]  %s145_s6, 128, %s378_s2, [#allocation5]  }
 0x146   :  { %308 = dma.done.wait [#allocation5], 128  }
 0x147   :  { %309 = vsyncadd [#allocation5], 4294967168 }
 0x148   :  { %151 = vsyncpa [#allocation4], 1 }
 0x149   :  { %152 = vsyncpa [#allocation7], 1 }
 0x14a   :  { %153 = vsyncpa [#allocation5], 1 }

// kernel: compute_sims_pallas.4
= control target key start
LH: loop header
LB: loop body
LE: loop exit
PB: predicated region body
PF: predicated region fallthrough
CT: control target
= control target key end

     0   :  { %s365_s0 = inlined_call_operand.vmem [shape: f32[128,128], index: 0, kind: input, shape index: {}]   ;;  %s366_s1 = inlined_call_operand.hbm [shape: f32[128,128], index: 1, kind: output, shape index: {}]  }
   0x1   :  { %v228_v0 = vld [vmem:[%s365_s0 + $0x10] sm:$0xff]  ;;  %v233_v1 = vld [vmem:[%s365_s0] sm:$0xff]  ;;  %v238_v2 = vld [vmem:[%s365_s0 + $0x18] sm:$0xff] }
   0x2   :  { %v27_v3 = vmul.f32 %v228_v0, %v228_v0  ;;  %v25_v4 = vmul.f32 %v233_v1, %v233_v1  ;;  %v247_v5 = vld [vmem:[%s365_s0 + $0x8] sm:$0xff]  ;;  %v28_v6 = vmul.f32 %v238_v2, %v238_v2  ;;  %v261_v9 = vld [vmem:[%s365_s0 + $0x20] sm:$0xff] }
   0x3   :  { %v26_v7 = vmul.f32 %v247_v5, %v247_v5  ;;  %v256_v8 = vld [vmem:[%s365_s0 + $0x28] sm:$0xff] }
   0x4   :  { %45 = vadd.xlane.f32.xlu1 %v27_v3  ;;  %41 = vadd.xlane.f32.xlu0 %v25_v4 }
   0x5   :  { %6 = vsyncpa [#allocation3], 0  ;;  %v30_v10 = vmul.f32 %v256_v8, %v256_v8  ;;  %v29_v11 = vmul.f32 %v261_v9, %v261_v9  ;;  %v270_v12 = vld [vmem:[%s365_s0 + $0x38] sm:$0xff]  ;;  %v275_v13 = vld [vmem:[%s365_s0 + $0x30] sm:$0xff] }
   0x6   :  { %v32_v14 = vmul.f32 %v270_v12, %v270_v12  ;;  %v31_v15 = vmul.f32 %v275_v13, %v275_v13  ;;  %v284_v16 = vld [vmem:[%s365_s0 + $0x48] sm:$0xff]  ;;  %v289_v17 = vld [vmem:[%s365_s0 + $0x40] sm:$0xff]  ;;  %v298_v20 = vld [vmem:[%s365_s0 + $0x58] sm:$0xff] }
   0x7   :  { %v34_v18 = vmul.f32 %v284_v16, %v284_v16  ;;  %v33_v19 = vmul.f32 %v289_v17, %v289_v17  ;;  %v303_v21 = vld [vmem:[%s365_s0 + $0x50] sm:$0xff]  ;;  %v36_v22 = vmul.f32 %v298_v20, %v298_v20  ;;  %v312_v24 = vld [vmem:[%s365_s0 + $0x68] sm:$0xff]  ;;  %v317_v25 = vld [vmem:[%s365_s0 + $0x60] sm:$0xff] }
   0x8   :  { %47 = vadd.xlane.f32.xlu1 %v28_v6  ;;  %43 = vadd.xlane.f32.xlu0 %v26_v7  ;;  %v35_v23 = vmul.f32 %v303_v21, %v303_v21  ;;  %v38_v26 = vmul.f32 %v312_v24, %v312_v24  ;;  %v37_v27 = vmul.f32 %v317_v25, %v317_v25  ;;  %v326_v28 = vld [vmem:[%s365_s0 + $0x78] sm:$0xff]  ;;  %v331_v29 = vld [vmem:[%s365_s0 + $0x70] sm:$0xff]  ;;  %s212_s0 = smov [#allocation2]  }
   0x9   :  { %v40_v30 = vmul.f32 %v326_v28, %v326_v28  ;;  %v39_v31 = vmul.f32 %v331_v29, %v331_v29  ;;  %s142_s9 = sshll.u32 %s212_s0, 4  ;;  %s143_s9 = int_to_ptr.vmem [resolvable:$true] %s142_s9 }
   0xa   :  { %s188_s10 = scalar_lea.vmem %s143_s9, 2048  ;;  %p193_p1 = scmp.lt.s32.totalorder %s143_s9, %s143_s9 }
   0xb   :  { %p189_p0 = scmp.ne.s32.totalorder %s143_s9, %s188_s10  ;;  %p194_p2 = scmp.lt.s32.totalorder %s188_s10, %s188_s10 }
   0xc   :  { %51 = vadd.xlane.f32.xlu1 %v30_v10  ;;  %49 = vadd.xlane.f32.xlu0 %v29_v11 }
   0xd   :  { %p195_p3 = por %p194_p2, %p193_p1 }
   0xf   :  { %p196_p4 = pnand %p195_p3, %p189_p0 }
  0x10   :  { %55 = vadd.xlane.f32.xlu1 %v32_v14  ;;  %53 = vadd.xlane.f32.xlu0 %v31_v15 }
  0x14   :  { %59 = vadd.xlane.f32.xlu1 %v34_v18  ;;  %57 = vadd.xlane.f32.xlu0 %v33_v19 }
  0x18   :  { %63 = vadd.xlane.f32.xlu1 %v36_v22  ;;  %61 = vadd.xlane.f32.xlu0 %v35_v23 }
  0x1c   :  { %67 = vadd.xlane.f32.xlu1 %v38_v26  ;;  %65 = vadd.xlane.f32.xlu0 %v37_v27 }
  0x20   :  { %71 = vadd.xlane.f32.xlu1 %v40_v30  ;;  %69 = vadd.xlane.f32.xlu0 %v39_v31 }
  0x91   :  { %v46_v32 = vpop.xlane.xlu1 %45  ;;  %v42_v33 = vpop.xlane.xlu0 %41 }
  0x92   :  { %v75_v34 = vmax.f32 %v46_v32, 1e-24  ;;  %v73_v35 = vmax.f32 %v42_v33, 1e-24 }
  0x94   :  { %156 = vrsqrt.f32 %v75_v34 }
  0x95   :  { %158 = vrsqrt.f32 %v73_v35  ;;  %v48_v36 = vpop.xlane.xlu1 %47  ;;  %v44_v37 = vpop.xlane.xlu0 %43 }
  0x96   :  { %v76_v38 = vmax.f32 %v48_v36, 1e-24  ;;  %v74_v39 = vmax.f32 %v44_v37, 1e-24 }
  0x98   :  { %160 = vrsqrt.f32 %v76_v38 }
  0x99   :  { %162 = vrsqrt.f32 %v74_v39  ;;  %v52_v40 = vpop.xlane.xlu1 %51  ;;  %v50_v41 = vpop.xlane.xlu0 %49 }
  0x9a   :  { %v78_v42 = vmax.f32 %v52_v40, 1e-24  ;;  %v77_v43 = vmax.f32 %v50_v41, 1e-24 }
  0x9c   :  { %164 = vrsqrt.f32 %v78_v42 }
  0x9d   :  { %166 = vrsqrt.f32 %v77_v43  ;;  %v56_v44 = vpop.xlane.xlu1 %55  ;;  %v54_v45 = vpop.xlane.xlu0 %53 }
  0x9e   :  { %v157_v46 = vpop.eup %156  ;;  %v80_v47 = vmax.f32 %v56_v44, 1e-24  ;;  %v79_v48 = vmax.f32 %v54_v45, 1e-24 }
  0x9f   :  { %v159_v49 = vpop.eup %158  ;;  %v107_v50 = vmul.f32 %v157_v46, %v228_v0 }
  0xa0   :  { %v105_v51 = vmul.f32 %v159_v49, %v233_v1  ;;  %168 = vrsqrt.f32 %v80_v47 }
  0xa1   :  { %123 = vst [vmem:[#allocation2 + $0x10] sm:$0xff] %v107_v50  ;;  %170 = vrsqrt.f32 %v79_v48  ;;  %v60_v52 = vpop.xlane.xlu1 %59  ;;  %v58_v53 = vpop.xlane.xlu0 %57 }
  0xa2   :  { %v161_v54 = vpop.eup %160  ;;  %121 = vst [vmem:[#allocation2] sm:$0xff] %v105_v51  ;;  %v82_v55 = vmax.f32 %v60_v52, 1e-24  ;;  %v81_v56 = vmax.f32 %v58_v53, 1e-24 }
  0xa3   :  { %v163_v57 = vpop.eup %162  ;;  %v108_v58 = vmul.f32 %v161_v54, %v238_v2 }
  0xa4   :  { %v106_v59 = vmul.f32 %v163_v57, %v247_v5  ;;  %172 = vrsqrt.f32 %v82_v55 }
  0xa5   :  { %124 = vst [vmem:[#allocation2 + $0x18] sm:$0xff] %v108_v58  ;;  %174 = vrsqrt.f32 %v81_v56  ;;  %v64_v60 = vpop.xlane.xlu1 %63  ;;  %v62_v61 = vpop.xlane.xlu0 %61 }
  0xa6   :  { %v165_v62 = vpop.eup %164  ;;  %122 = vst [vmem:[#allocation2 + $0x8] sm:$0xff] %v106_v59  ;;  %v84_v63 = vmax.f32 %v64_v60, 1e-24  ;;  %v83_v0 = vmax.f32 %v62_v61, 1e-24 }
  0xa7   :  { %v167_v1 = vpop.eup %166  ;;  %v110_v3 = vmul.f32 %v165_v62, %v256_v8 }
  0xa8   :  { %v109_v4 = vmul.f32 %v167_v1, %v261_v9  ;;  %176 = vrsqrt.f32 %v84_v63 }
  0xa9   :  { %126 = vst [vmem:[#allocation2 + $0x28] sm:$0xff] %v110_v3  ;;  %178 = vrsqrt.f32 %v83_v0  ;;  %v68_v2 = vpop.xlane.xlu1 %67  ;;  %v66_v6 = vpop.xlane.xlu0 %65 }
  0xaa   :  { %v169_v5 = vpop.eup %168  ;;  %125 = vst [vmem:[#allocation2 + $0x20] sm:$0xff] %v109_v4  ;;  %v86_v7 = vmax.f32 %v68_v2, 1e-24  ;;  %v85_v10 = vmax.f32 %v66_v6, 1e-24 }
  0xab   :  { %v171_v11 = vpop.eup %170  ;;  %v112_v14 = vmul.f32 %v169_v5, %v270_v12 }
  0xac   :  { %v111_v15 = vmul.f32 %v171_v11, %v275_v13  ;;  %180 = vrsqrt.f32 %v86_v7 }
  0xad   :  { %128 = vst [vmem:[#allocation2 + $0x38] sm:$0xff] %v112_v14  ;;  %182 = vrsqrt.f32 %v85_v10  ;;  %v72_v8 = vpop.xlane.xlu1 %71  ;;  %v70_v18 = vpop.xlane.xlu0 %69 }
  0xae   :  { %v173_v9 = vpop.eup %172  ;;  %127 = vst [vmem:[#allocation2 + $0x30] sm:$0xff] %v111_v15  ;;  %v88_v19 = vmax.f32 %v72_v8, 1e-24  ;;  %v87_v22 = vmax.f32 %v70_v18, 1e-24 }
  0xaf   :  { %v175_v23 = vpop.eup %174  ;;  %v114_v26 = vmul.f32 %v173_v9, %v284_v16 }
  0xb0   :  { %v113_v27 = vmul.f32 %v175_v23, %v289_v17  ;;  %184 = vrsqrt.f32 %v88_v19 }
  0xb1   :  { %130 = vst [vmem:[#allocation2 + $0x48] sm:$0xff] %v114_v26  ;;  %186 = vrsqrt.f32 %v87_v22 }
  0xb2   :  { %v177_v12 = vpop.eup %176  ;;  %129 = vst [vmem:[#allocation2 + $0x40] sm:$0xff] %v113_v27 }
  0xb3   :  { %v179_v13 = vpop.eup %178  ;;  %v116_v30 = vmul.f32 %v177_v12, %v298_v20 }
  0xb4   :  { %v115_v31 = vmul.f32 %v179_v13, %v303_v21 }
  0xb5   :  { %132 = vst [vmem:[#allocation2 + $0x58] sm:$0xff] %v116_v30 }
  0xb6   :  { %v181_v32 = vpop.eup %180  ;;  %131 = vst [vmem:[#allocation2 + $0x50] sm:$0xff] %v115_v31 }
  0xb7   :  { %v183_v33 = vpop.eup %182  ;;  %v118_v34 = vmul.f32 %v181_v32, %v312_v24 }
  0xb8   :  { %v117_v16 = vmul.f32 %v183_v33, %v317_v25 }
  0xb9   :  { %134 = vst [vmem:[#allocation2 + $0x68] sm:$0xff] %v118_v34 }
  0xba   :  { %v185_v17 = vpop.eup %184  ;;  %133 = vst [vmem:[#allocation2 + $0x60] sm:$0xff] %v117_v16 }
  0xbb   :  { %v187_v35 = vpop.eup %186  ;;  %v120_v36 = vmul.f32 %v185_v17, %v326_v28 }
  0xbc   :  { %v119_v20 = vmul.f32 %v187_v35, %v331_v29 }
  0xbd   :  { %136 = vst [vmem:[#allocation2 + $0x78] sm:$0xff] %v120_v36 }
  0xbe   :  { %135 = vst [vmem:[#allocation2 + $0x70] sm:$0xff] %v119_v20 }
  0xbf   :  { %199 = shalt.err (!%p196_p4)
}
  0xc0   :  { %s200_s13 = scalar_lea.hbm %s366_s1, 2048 }
  0xc1   :  { %p201_p5 = scmp.ne.s32.totalorder %s366_s1, %s200_s13  ;;  %p204_p6 = scmp.lt.u32.totalorder %s200_s13, %s366_s1 }
  0xc3   :  { %p206_p7 = pnand %p204_p6, %p201_p5 }
  0xc5   :  { %209 = shalt.err (!%p206_p7)
}
  0xc6   :  { %s213_s18 = smov 128   ;;  %s214_s19 = smov 8  }
  0xc7   :  { %148 = dma.vmem_to_hbm [thread:$0]  %s143_s9, 2048, %s366_s1, [#allocation3], %s213_s18, %s213_s18, %s214_s19  }
  0xc8   :  { %210 = dma.done.wait [#allocation3], 2048  }
  0xc9   :  { %211 = vsyncadd [#allocation3], 4294965248 }
  0xca   :  { %152 = vsyncpa [#allocation3], 1 }

// kernel: compute_sims_pallas.3
= control target key start
LH: loop header
LB: loop body
LE: loop exit
PB: predicated region body
PF: predicated region fallthrough
CT: control target
= control target key end

     0   :  { %s84_s0 = inlined_call_operand.vmem [shape: f32[8,128], index: 0, kind: input, shape index: {}]   ;;  %s85_s1 = inlined_call_operand.hbm [shape: f32[8,128], index: 1, kind: output, shape index: {}]  }
   0x1   :  { %v9_v0 = vld [vmem:[%s84_s0] sm:$0xff] }
   0x2   :  { %6 = vsyncpa [#allocation3], 0  ;;  %v10_v1 = vmul.f32 %v9_v0, %v9_v0  ;;  %s58_s8 = smov [#allocation2]  }
   0x3   :  { %s23_s9 = sshll.u32 %s58_s8, 4  ;;  %s24_s9 = int_to_ptr.vmem [resolvable:$true] %s23_s9 }
   0x4   :  { %11 = vadd.xlane.f32.xlu0 %v10_v1  ;;  %s34_s10 = scalar_lea.vmem %s24_s9, 128  ;;  %p39_p1 = scmp.lt.s32.totalorder %s24_s9, %s24_s9 }
   0x5   :  { %p35_p0 = scmp.ne.s32.totalorder %s24_s9, %s34_s10  ;;  %p40_p2 = scmp.lt.s32.totalorder %s34_s10, %s34_s10 }
   0x7   :  { %p41_p3 = por %p40_p2, %p39_p1 }
   0x9   :  { %p42_p4 = pnand %p41_p3, %p35_p0 }
  0x91   :  { %v12_v2 = vpop.xlane.xlu0 %11 }
  0x92   :  { %v13_v3 = vmax.f32 %v12_v2, 1e-24 }
  0x94   :  { %32 = vrsqrt.f32 %v13_v3 }
  0x9e   :  { %v33_v4 = vpop.eup %32 }
  0x9f   :  { %v15_v5 = vmul.f32 %v33_v4, %v9_v0 }
  0xa1   :  { %16 = vst [vmem:[#allocation2] sm:$0xff] %v15_v5 }
  0xa2   :  { %45 = shalt.err (!%p42_p4)
}
  0xa3   :  { %s46_s12 = scalar_lea.hbm %s85_s1, 128 }
  0xa4   :  { %p47_p5 = scmp.ne.s32.totalorder %s85_s1, %s46_s12  ;;  %p50_p6 = scmp.lt.u32.totalorder %s46_s12, %s85_s1 }
  0xa6   :  { %p52_p7 = pnand %p50_p6, %p47_p5 }
  0xa8   :  { %55 = shalt.err (!%p52_p7)
}
  0xa9   :  { %26 = dma.vmem_to_hbm [thread:$0]  %s24_s9, 128, %s85_s1, [#allocation3]  }
  0xaa   :  { %56 = dma.done.wait [#allocation3], 128  }
  0xab   :  { %57 = vsyncadd [#allocation3], 4294967168 }
  0xac   :  { %30 = vsyncpa [#allocation3], 1 }

</bundles_post_ra>
